<compile_context>
chip_gen: v6e
topology: v6e:2x2x1
jax: 0.10.0
libtpu: 0.0.40
codegen_flags: <defaults>
</compile_context>

<pallas_src>
import functools

import jax
import jax.numpy as jnp
from jax.experimental import pallas as pl
from jax.experimental.pallas import tpu as pltpu

LANE = 128
SUBLANE = 8
MAX_TILE = 512                     # upper bound for the A_hat row / K tiles
VMEM_LIMIT = 48 * 1024 * 1024      # fits v7x's 64 MiB per-TC VMEM with headroom


def _round_up(x, m):
    return ((x + m - 1) // m) * m


def _pad2(a, rows, cols, dtype=None):
    dtype = a.dtype if dtype is None else dtype
    out = jnp.zeros((rows, cols), dtype)
    return out.at[: a.shape[0], : a.shape[1]].set(a.astype(dtype))


def _pick_tiles(n_pad, max_tile=MAX_TILE):
    """Largest 128-multiple tiles dividing n_pad; row tile prefers >=2 tiles (v7x megacore)."""
    cands = [t for t in (512, 384, 256, 128) if t <= max_tile and n_pad % t == 0]
    tk = cands[0]                                                # reduction tile: largest
    tm = next((t for t in cands if n_pad // t >= 2), cands[0])   # keep both TCs busy if possible
    return tm, tk


# ------------------- GCN layer kernel (layers 1/2): act((A @ X) @ W + b) ------------------- #
def gcn_layer_kernel(a_ref, x_ref, w_ref, b_ref, out_ref, acc_ref, *, apply_relu):
    k = pl.program_id(1)

    @pl.when(k == 0)
    def _():
        acc_ref[...] = jnp.zeros_like(acc_ref)

    # Aggregation: bf16 MXU inputs, f32 accumulation.
    acc_ref[...] += jnp.dot(a_ref[...], x_ref[...], preferred_element_type=jnp.float32)

    @pl.when(k == pl.num_programs(1) - 1)
    def _():
        # Epilogue fully in f32: (A @ X) @ W + b  (== A @ (X @ W) + b); W/b are resident f32.
        h = jnp.dot(acc_ref[...], w_ref[...], preferred_element_type=jnp.float32)
        h = h + b_ref[...]
        if apply_relu:
            h = jnp.maximum(h, 0.0)
        out_ref[...] = h.astype(out_ref.dtype)


def gcn_layer(a_hat, x, w, b, *, apply_relu, out_dtype=jnp.bfloat16):
    n = a_hat.shape[0]
    f_in = x.shape[1]
    f_out = w.shape[1]
    tm, tk = _pick_tiles(n)
    grid = (n // tm, n // tk)

    flops = 2 * n * n * f_in + 2 * n * f_in * f_out
    bytes_accessed = (
        n * n * 2                          # A_hat (bf16), streamed once
        + grid[0] * n * f_in * 2           # X (bf16), re-streamed once per row tile
        + f_in * f_out * 4 + f_out * 4     # W / b resident (constant index_map)
        + n * f_out * 2                    # bf16 output
    )

    kernel = functools.partial(gcn_layer_kernel, apply_relu=apply_relu)
    return pl.pallas_call(
        kernel,
        out_shape=jax.ShapeDtypeStruct((n, f_out), out_dtype),
        grid_spec=pltpu.PrefetchScalarGridSpec(
            num_scalar_prefetch=0,
            grid=grid,
            in_specs=[
                pl.BlockSpec((tm, tk), lambda i, k: (i, k)),       # A_hat tile (bf16)
                pl.BlockSpec((tk, f_in), lambda i, k: (k, 0)),     # X row block (bf16)
                pl.BlockSpec((f_in, f_out), lambda i, k: (0, 0)),  # W (f32, VMEM resident)
                pl.BlockSpec((1, f_out), lambda i, k: (0, 0)),     # bias (f32)
            ],
            out_specs=pl.BlockSpec((tm, f_out), lambda i, k: (i, 0)),
            scratch_shapes=[pltpu.VMEM((tm, f_in), jnp.float32)],
        ),
        compiler_params=pltpu.CompilerParams(
            dimension_semantics=("parallel", "arbitrary"),
            vmem_limit_bytes=VMEM_LIMIT,
        ),
        cost_estimate=pl.CostEstimate(flops=flops, transcendentals=0,
                                      bytes_accessed=bytes_accessed),
    )(a_hat, x, w, b)


# ---- fused layer 3: ((A @ X) @ W3 + b3) pooled by P, then @ WL + bl, in one kernel ---- #
def gcn_final_kernel(a_ref, x_ref, w_ref, b_ref, p_ref, wl_ref, bl_ref,
                     out_ref, acc_ref, pool_ref):
    i = pl.program_id(0)
    k = pl.program_id(1)

    @pl.when(jnp.logical_and(i == 0, k == 0))
    def _():
        pool_ref[...] = jnp.zeros_like(pool_ref)

    @pl.when(k == 0)
    def _():
        acc_ref[...] = jnp.zeros_like(acc_ref)

    acc_ref[...] += jnp.dot(a_ref[...], x_ref[...], preferred_element_type=jnp.float32)

    @pl.when(k == pl.num_programs(1) - 1)
    def _():
        # Layer-3 epilogue for this row tile (f32), no ReLU.
        h = jnp.dot(acc_ref[...], w_ref[...], preferred_element_type=jnp.float32) + b_ref[...]
        # global_mean_pool: accumulate P[:, row_tile] @ h3 into the per-graph accumulator.
        pool_ref[...] += jnp.dot(p_ref[...], h, preferred_element_type=jnp.float32)

        @pl.when(i == pl.num_programs(0) - 1)
        def _():
            out_ref[...] = (jnp.dot(pool_ref[...], wl_ref[...],
                                    preferred_element_type=jnp.float32) + bl_ref[...])


def gcn_final_layer(a_hat, x, w, b, pool, wl, bl):
    n = a_hat.shape[0]
    f_in = x.shape[1]
    f_out = w.shape[1]
    g_pad = pool.shape[0]
    c_pad = wl.shape[1]
    tm, tk = _pick_tiles(n)
    grid = (n // tm, n // tk)

    flops = (2 * n * n * f_in + 2 * n * f_in * f_out
             + 2 * g_pad * n * f_out + 2 * g_pad * f_out * c_pad)
    bytes_accessed = (
        n * n * 2 + grid[0] * n * f_in * 2
        + f_in * f_out * 4 + f_out * 4
        + g_pad * n * 4 + f_out * c_pad * 4 + c_pad * 4
        + g_pad * c_pad * 4
    )

    return pl.pallas_call(
        gcn_final_kernel,
        out_shape=jax.ShapeDtypeStruct((g_pad, c_pad), jnp.float32),
        grid_spec=pltpu.PrefetchScalarGridSpec(
            num_scalar_prefetch=0,
            grid=grid,
            in_specs=[
                pl.BlockSpec((tm, tk), lambda i, k: (i, k)),        # A_hat tile (bf16)
                pl.BlockSpec((tk, f_in), lambda i, k: (k, 0)),      # H2 row block (bf16)
                pl.BlockSpec((f_in, f_out), lambda i, k: (0, 0)),   # W3 (f32, resident)
                pl.BlockSpec((1, f_out), lambda i, k: (0, 0)),      # b3 (f32)
                pl.BlockSpec((g_pad, tm), lambda i, k: (0, i)),     # mean-pool cols for row tile
                pl.BlockSpec((f_out, c_pad), lambda i, k: (0, 0)),  # final Linear weight (f32)
                pl.BlockSpec((1, c_pad), lambda i, k: (0, 0)),      # final Linear bias (f32)
            ],
            out_specs=pl.BlockSpec((g_pad, c_pad), lambda i, k: (0, 0)),
            scratch_shapes=[pltpu.VMEM((tm, f_in), jnp.float32),
                            pltpu.VMEM((g_pad, f_out), jnp.float32)],
        ),
        compiler_params=pltpu.CompilerParams(
            # Row axis carries the pooled-graph accumulator -> it is a reduction here.
            dimension_semantics=("arbitrary", "arbitrary"),
            vmem_limit_bytes=VMEM_LIMIT,
        ),
        cost_estimate=pl.CostEstimate(flops=flops, transcendentals=0,
                                      bytes_accessed=bytes_accessed),
    )(a_hat, x, w, b, pool, wl, bl)


# ------------------------------------ JAX wrapper -------------------------------------- #
def _scatter_a_hat_padded(edge_index, n, n_pad, dtype=jnp.bfloat16):
    """PyG-faithful gcn_norm adjacency, built directly in the padded buffer, cast to bf16."""
    src, dst = edge_index[0], edge_index[1]
    not_self = (src != dst).astype(jnp.float32)
    # scatter-ADD so duplicate edges count (GCNConv sums messages); row=dst aggregates
    # incoming edges; existing self-loops dropped and replaced by one unit loop.
    adj = jnp.zeros((n_pad, n_pad), jnp.float32).at[dst, src].add(not_self)
    idx = jnp.arange(n)
    adj = adj.at[idx, idx].add(1.0)                          # add_remaining_self_loops
    deg = jnp.sum(adj, axis=1)                               # in-degree + 1 (0 for padding)
    dinv = jnp.where(deg > 0, jax.lax.rsqrt(deg), 0.0)
    # single fused elementwise pass: D^-1/2 scaling + bf16 cast
    return (adj * dinv[:, None] * dinv[None, :]).astype(dtype)


def gcn_forward(x, edge_index, batch, params, num_graphs):
    x = x.astype(jnp.float32)
    n = x.shape[0]
    (w1, b1, w2, b2, w3, b3, wl, bl) = params

    n_pad = _round_up(n, LANE)
    f_pad = _round_up(x.shape[1], LANE)
    h_pad = _round_up(w1.shape[1], LANE)
    c_pad = _round_up(wl.shape[1], LANE)
    g_pad = _round_up(num_graphs, SUBLANE)

    # TODO(synk): for genuinely large graphs, replace the dense O(N^2) A_hat with a
    # scalar-prefetched CSR gather path (PrefetchScalarGridSpec + make_async_copy).
    a_p = _scatter_a_hat_padded(edge_index, n, n_pad)        # bf16, built in padded buffer

    onehot = (batch[None, :] == jnp.arange(num_graphs)[:, None]).astype(jnp.float32)
    counts = jnp.maximum(jnp.sum(onehot, axis=1, keepdims=True), 1.0)
    pool = onehot / counts                                   # [G, N] mean-pool matrix
    p_p = _pad2(pool, g_pad, n_pad)                          # f32 (tiny: 8 x n_pad)

    # bf16 node features / activations (dominant HBM stream); f32 weights & biases stay
    # VMEM-resident per layer so the epilogue matmuls keep full f32 precision.
    x_p = _pad2(x, n_pad, f_pad, jnp.bfloat16)
    w1_p, b1_p = _pad2(w1, f_pad, h_pad), _pad2(b1, 1, h_pad)
    w2_p, b2_p = _pad2(w2, h_pad, h_pad), _pad2(b2, 1, h_pad)
    w3_p, b3_p = _pad2(w3, h_pad, h_pad), _pad2(b3, 1, h_pad)
    wl_p, bl_p = _pad2(wl, h_pad, c_pad), _pad2(bl, 1, c_pad)

    h = gcn_layer(a_p, x_p, w1_p, b1_p, apply_relu=True)     # conv1 + relu (bf16 out)
    h = gcn_layer(a_p, h, w2_p, b2_p, apply_relu=True)       # conv2 + relu (bf16 out)
    # conv3 + global_mean_pool + final Linear fused into one kernel.
    # TODO(synk): F.dropout(p=0.5, training=self.training) is identity in eval mode.
    out_pad = gcn_final_layer(a_p, h, w3_p, b3_p, p_p, wl_p, bl_p)
    return out_pad[:num_graphs, : wl.shape[1]]


# -------------------------------------- reference -------------------------------------- #
def _build_a_hat_f32(edge_index, n):
    src, dst = edge_index[0], edge_index[1]
    not_self = (src != dst).astype(jnp.float32)
    adj = jnp.zeros((n, n), jnp.float32).at[dst, src].add(not_self)
    adj = adj + jnp.eye(n, dtype=jnp.float32)
    deg = jnp.sum(adj, axis=1)
    dinv = jnp.where(deg > 0, 1.0 / jnp.sqrt(deg), 0.0)
    return adj * dinv[:, None] * dinv[None, :]


def gcn_reference(x, edge_index, batch, params, num_graphs):
    x = x.astype(jnp.float32)
    n = x.shape[0]
    a_hat = _build_a_hat_f32(edge_index, n)

    (w1, b1, w2, b2, w3, b3, wl, bl) = params
    h = jnp.maximum(a_hat @ (x @ w1) + b1, 0.0)
    h = jnp.maximum(a_hat @ (h @ w2) + b2, 0.0)
    h = a_hat @ (h @ w3) + b3

    onehot = (batch[None, :] == jnp.arange(num_graphs)[:, None]).astype(jnp.float32)
    counts = jnp.maximum(jnp.sum(onehot, axis=1, keepdims=True), 1.0)
    g = (onehot / counts) @ h
    return g @ wl + bl


# ----------------------------------------- main ---------------------------------------- #
if __name__ == "__main__":
    NUM_NODES = 16
    NUM_FEATURES = 8
    HIDDEN = 32
    NUM_CLASSES = 4
    NUM_GRAPHS = 2
    NUM_EDGES = 40

    key = jax.random.PRNGKey(0)
    k_x, k_e, k_w1, k_w2, k_w3, k_wl, k_bl = jax.random.split(key, 7)

    x = jax.random.normal(k_x, (NUM_NODES, NUM_FEATURES), dtype=jnp.float32)
    edge_index = jax.random.randint(k_e, (2, NUM_EDGES), 0, NUM_NODES, dtype=jnp.int32)
    batch = jnp.concatenate([
        jnp.zeros((NUM_NODES // 2,), jnp.int32),
        jnp.ones((NUM_NODES - NUM_NODES // 2,), jnp.int32),
    ])

    # Deterministic synthetic parameters (glorot-ish GCNConv weights, zero bias; small
    # normal final Linear) — not a checkpoint load.
    def glorot(k, fan_in, fan_out):
        lim = jnp.sqrt(6.0 / (fan_in + fan_out))
        return jax.random.uniform(k, (fan_in, fan_out), jnp.float32, -lim, lim)

    w1 = glorot(k_w1, NUM_FEATURES, HIDDEN)
    b1 = jnp.zeros((1, HIDDEN), jnp.float32)
    w2 = glorot(k_w2, HIDDEN, HIDDEN)
    b2 = jnp.zeros((1, HIDDEN), jnp.float32)
    w3 = glorot(k_w3, HIDDEN, HIDDEN)
    b3 = jnp.zeros((1, HIDDEN), jnp.float32)
    wl = 0.1 * jax.random.normal(k_wl, (HIDDEN, NUM_CLASSES), jnp.float32)
    bl = 0.01 * jax.random.normal(k_bl, (1, NUM_CLASSES), jnp.float32)
    params = (w1, b1, w2, b2, w3, b3, wl, bl)

    fwd = jax.jit(gcn_forward, static_argnames=("num_graphs",))
    out = fwd(x, edge_index, batch, params, num_graphs=NUM_GRAPHS)
    out = jax.block_until_ready(out)

    ref = gcn_reference(x, edge_index, batch, params, NUM_GRAPHS)
    assert out.shape == (NUM_GRAPHS, NUM_CLASSES)
    # bf16 A_hat / activations with f32 accumulation + f32 epilogue -> bf16-level tolerance.
    assert jnp.allclose(out, ref, atol=3e-2, rtol=3e-2)

    print("KERNEL_OK")
</pallas_src>

<mosaic_0001>
module attributes {stable_mosaic.version = 11 : i64} {
  func.func private @main(%arg0: i32) attributes {dimension_semantics = [#tpu.dimension_semantics<core_parallel>], iteration_bounds = array<i64: 2>, tpu.core_type = #tpu.core_type<sc_scalar_subcore>, window_params = []} {
    return
  }
}

module attributes {stable_mosaic.version = 11 : i64} {
  func.func private @main(%arg0: i32) attributes {dimension_semantics = [#tpu.dimension_semantics<core_parallel>], iteration_bounds = array<i64: 2>, tpu.core_type = #tpu.core_type<sc_scalar_subcore>, window_params = []} {
    return
  }
}

module attributes {stable_mosaic.version = 11 : i64} {
  func.func @gcn_final_kernel(%arg0: i32, %arg1: i32, %arg2: memref<128x128xbf16, #tpu.memory_space<vmem>>, %arg3: memref<128x128xbf16, #tpu.memory_space<vmem>>, %arg4: memref<128x128xf32, #tpu.memory_space<vmem>>, %arg5: memref<1x128xf32, #tpu.memory_space<vmem>>, %arg6: memref<8x128xf32, #tpu.memory_space<vmem>>, %arg7: memref<128x128xf32, #tpu.memory_space<vmem>>, %arg8: memref<1x128xf32, #tpu.memory_space<vmem>>, %arg9: memref<8x128xf32, #tpu.memory_space<vmem>>, %arg10: memref<128x128xf32, #tpu.memory_space<vmem>>, %arg11: memref<8x128xf32, #tpu.memory_space<vmem>>) attributes {dimension_semantics = [#tpu.dimension_semantics<arbitrary>, #tpu.dimension_semantics<arbitrary>], iteration_bounds = array<i64: 1, 1>, scalar_prefetch = 0 : i64, scratch_operands = 2 : i64, tpu.core_type = #tpu.core_type<tc>, window_params = [{transform_indices = @transform_0, window_bounds = array<i64: 128, 128>}, {transform_indices = @transform_1, window_bounds = array<i64: 128, 128>}, {pipeline_mode = #tpu.pipeline_mode<synchronous>, transform_indices = @transform_2, window_bounds = array<i64: 128, 128>}, {pipeline_mode = #tpu.pipeline_mode<synchronous>, transform_indices = @transform_3, window_bounds = array<i64: 1, 128>}, {transform_indices = @transform_4, window_bounds = array<i64: 8, 128>}, {pipeline_mode = #tpu.pipeline_mode<synchronous>, transform_indices = @transform_5, window_bounds = array<i64: 128, 128>}, {pipeline_mode = #tpu.pipeline_mode<synchronous>, transform_indices = @transform_6, window_bounds = array<i64: 1, 128>}, {pipeline_mode = #tpu.pipeline_mode<synchronous>, transform_indices = @transform_7, window_bounds = array<i64: 8, 128>}]} {
    %c0_i32 = arith.constant 0 : i32
    %0 = arith.cmpi eq, %arg0, %c0_i32 : i32
    %c0_i32_0 = arith.constant 0 : i32
    %1 = arith.cmpi eq, %arg1, %c0_i32_0 : i32
    %2 = arith.andi %0, %1 : i1
    %3 = arith.extui %2 : i1 to i32
    %c0_i32_1 = arith.constant 0 : i32
    %4 = arith.cmpi ne, %3, %c0_i32_1 : i32
    scf.if %4 {
      %cst_13 = arith.constant 0.000000e+00 : f32
      %17 = vector.broadcast %cst_13 : f32 to vector<8x128xf32>
      %c0_14 = arith.constant 0 : index
      %c0_15 = arith.constant 0 : index
      %18 = vector.load %arg11[%c0_14, %c0_15] : memref<8x128xf32, #tpu.memory_space<vmem>>, vector<8x128xf32>
      tpu.vector_store %arg11[%c0_14, %c0_15], %17 {strides = array<i32>} : memref<8x128xf32, #tpu.memory_space<vmem>>, vector<8x128xf32>,
    } else {
    }
    %c0_i32_2 = arith.constant 0 : i32
    %5 = arith.cmpi eq, %arg1, %c0_i32_2 : i32
    %6 = arith.extui %5 : i1 to i32
    %c0_i32_3 = arith.constant 0 : i32
    %7 = arith.cmpi ne, %6, %c0_i32_3 : i32
    scf.if %7 {
      %cst_13 = arith.constant 0.000000e+00 : f32
      %17 = vector.broadcast %cst_13 : f32 to vector<128x128xf32>
      %c0_14 = arith.constant 0 : index
      %c0_15 = arith.constant 0 : index
      %18 = vector.load %arg10[%c0_14, %c0_15] : memref<128x128xf32, #tpu.memory_space<vmem>>, vector<128x128xf32>
      tpu.vector_store %arg10[%c0_14, %c0_15], %17 {strides = array<i32>} : memref<128x128xf32, #tpu.memory_space<vmem>>, vector<128x128xf32>,
    } else {
    }
    %c0 = arith.constant 0 : index
    %c0_4 = arith.constant 0 : index
    %8 = vector.load %arg10[%c0, %c0_4] : memref<128x128xf32, #tpu.memory_space<vmem>>, vector<128x128xf32>
    %c0_5 = arith.constant 0 : index
    %c0_6 = arith.constant 0 : index
    %9 = vector.load %arg2[%c0_5, %c0_6] : memref<128x128xbf16, #tpu.memory_space<vmem>>, vector<128x128xbf16>
    %c0_7 = arith.constant 0 : index
    %c0_8 = arith.constant 0 : index
    %10 = vector.load %arg3[%c0_7, %c0_8] : memref<128x128xbf16, #tpu.memory_space<vmem>>, vector<128x128xbf16>
    %cst = arith.constant dense<0.000000e+00> : vector<128x128xf32>
    %11 = tpu.matmul %9, %10, %cst {dimension_numbers = #tpu.dot_dimension_numbers<[1], [0], [0], [1], [0, 0, 1, 1], [], []>} : vector<128x128xbf16>, vector<128x128xbf16>, vector<128x128xf32> -> vector<128x128xf32>
    %12 = arith.addf %8, %11 : vector<128x128xf32>
    %c0_9 = arith.constant 0 : index
    %c0_10 = arith.constant 0 : index
    %13 = vector.load %arg10[%c0_9, %c0_10] : memref<128x128xf32, #tpu.memory_space<vmem>>, vector<128x128xf32>
    tpu.vector_store %arg10[%c0_9, %c0_10], %12 {strides = array<i32>} : memref<128x128xf32, #tpu.memory_space<vmem>>, vector<128x128xf32>,
    %c0_i32_11 = arith.constant 0 : i32
    %14 = arith.cmpi eq, %arg1, %c0_i32_11 : i32
    %15 = arith.extui %14 : i1 to i32
    %c0_i32_12 = arith.constant 0 : i32
    %16 = arith.cmpi ne, %15, %c0_i32_12 : i32
    scf.if %16 {
      %c0_13 = arith.constant 0 : index
      %c0_14 = arith.constant 0 : index
      %17 = vector.load %arg10[%c0_13, %c0_14] : memref<128x128xf32, #tpu.memory_space<vmem>>, vector<128x128xf32>
      %c0_15 = arith.constant 0 : index
      %c0_16 = arith.constant 0 : index
      %18 = vector.load %arg4[%c0_15, %c0_16] : memref<128x128xf32, #tpu.memory_space<vmem>>, vector<128x128xf32>
      %cst_17 = arith.constant dense<0.000000e+00> : vector<128x128xf32>
      %19 = tpu.matmul %17, %18, %cst_17 {dimension_numbers = #tpu.dot_dimension_numbers<[1], [0], [0], [1], [0, 0, 1, 1], [], []>} : vector<128x128xf32>, vector<128x128xf32>, vector<128x128xf32> -> vector<128x128xf32>
      %c0_18 = arith.constant 0 : index
      %c0_19 = arith.constant 0 : index
      %20 = vector.load %arg5[%c0_18, %c0_19] : memref<1x128xf32, #tpu.memory_space<vmem>>, vector<1x128xf32>
      %21 = vector.broadcast %20 : vector<1x128xf32> to vector<128x128xf32>
      %22 = arith.addf %19, %21 : vector<128x128xf32>
      %c0_20 = arith.constant 0 : index
      %c0_21 = arith.constant 0 : index
      %23 = vector.load %arg11[%c0_20, %c0_21] : memref<8x128xf32, #tpu.memory_space<vmem>>, vector<8x128xf32>
      %c0_22 = arith.constant 0 : index
      %c0_23 = arith.constant 0 : index
      %24 = vector.load %arg6[%c0_22, %c0_23] : memref<8x128xf32, #tpu.memory_space<vmem>>, vector<8x128xf32>
      %cst_24 = arith.constant dense<0.000000e+00> : vector<8x128xf32>
      %25 = tpu.matmul %24, %22, %cst_24 {dimension_numbers = #tpu.dot_dimension_numbers<[1], [0], [0], [1], [0, 0, 1, 1], [], []>} : vector<8x128xf32>, vector<128x128xf32>, vector<8x128xf32> -> vector<8x128xf32>
      %26 = arith.addf %23, %25 : vector<8x128xf32>
      %c0_25 = arith.constant 0 : index
      %c0_26 = arith.constant 0 : index
      %27 = vector.load %arg11[%c0_25, %c0_26] : memref<8x128xf32, #tpu.memory_space<vmem>>, vector<8x128xf32>
      tpu.vector_store %arg11[%c0_25, %c0_26], %26 {strides = array<i32>} : memref<8x128xf32, #tpu.memory_space<vmem>>, vector<8x128xf32>,
      %c0_i32_27 = arith.constant 0 : i32
      %28 = arith.cmpi eq, %arg0, %c0_i32_27 : i32
      %29 = arith.extui %28 : i1 to i32
      %c0_i32_28 = arith.constant 0 : i32
      %30 = arith.cmpi ne, %29, %c0_i32_28 : i32
      scf.if %30 {
        %c0_29 = arith.constant 0 : index
        %c0_30 = arith.constant 0 : index
        %31 = vector.load %arg11[%c0_29, %c0_30] : memref<8x128xf32, #tpu.memory_space<vmem>>, vector<8x128xf32>
        %c0_31 = arith.constant 0 : index
        %c0_32 = arith.constant 0 : index
        %32 = vector.load %arg7[%c0_31, %c0_32] : memref<128x128xf32, #tpu.memory_space<vmem>>, vector<128x128xf32>
        %cst_33 = arith.constant dense<0.000000e+00> : vector<8x128xf32>
        %33 = tpu.matmul %31, %32, %cst_33 {dimension_numbers = #tpu.dot_dimension_numbers<[1], [0], [0], [1], [0, 0, 1, 1], [], []>} : vector<8x128xf32>, vector<128x128xf32>, vector<8x128xf32> -> vector<8x128xf32>
        %c0_34 = arith.constant 0 : index
        %c0_35 = arith.constant 0 : index
        %34 = vector.load %arg8[%c0_34, %c0_35] : memref<1x128xf32, #tpu.memory_space<vmem>>, vector<1x128xf32>
        %35 = vector.broadcast %34 : vector<1x128xf32> to vector<8x128xf32>
        %36 = arith.addf %33, %35 : vector<8x128xf32>
        %c0_36 = arith.constant 0 : index
        %c0_37 = arith.constant 0 : index
        %37 = vector.load %arg9[%c0_36, %c0_37] : memref<8x128xf32, #tpu.memory_space<vmem>>, vector<8x128xf32>
        tpu.vector_store %arg9[%c0_36, %c0_37], %36 {strides = array<i32>} : memref<8x128xf32, #tpu.memory_space<vmem>>, vector<8x128xf32>,
      } else {
      }
    } else {
    }
    return
  }
  func.func @transform_0(%arg0: i32, %arg1: i32) -> (i32, i32) {
    %c0_i32 = arith.constant 0 : i32
    return %arg0, %arg1 : i32, i32
  }
  func.func @transform_1(%arg0: i32, %arg1: i32) -> (i32, i32) {
    %c0_i32 = arith.constant 0 : i32
    %c0_i32_0 = arith.constant 0 : i32
    return %arg1, %c0_i32 : i32, i32
  }
  func.func @transform_2(%arg0: i32, %arg1: i32) -> (i32, i32) {
    %c0_i32 = arith.constant 0 : i32
    %c0_i32_0 = arith.constant 0 : i32
    %c0_i32_1 = arith.constant 0 : i32
    return %c0_i32, %c0_i32_0 : i32, i32
  }
  func.func @transform_3(%arg0: i32, %arg1: i32) -> (i32, i32) {
    %c0_i32 = arith.constant 0 : i32
    %c0_i32_0 = arith.constant 0 : i32
    %c0_i32_1 = arith.constant 0 : i32
    return %c0_i32, %c0_i32_0 : i32, i32
  }
  func.func @transform_4(%arg0: i32, %arg1: i32) -> (i32, i32) {
    %c0_i32 = arith.constant 0 : i32
    %c0_i32_0 = arith.constant 0 : i32
    return %c0_i32, %arg0 : i32, i32
  }
  func.func @transform_5(%arg0: i32, %arg1: i32) -> (i32, i32) {
    %c0_i32 = arith.constant 0 : i32
    %c0_i32_0 = arith.constant 0 : i32
    %c0_i32_1 = arith.constant 0 : i32
    return %c0_i32, %c0_i32_0 : i32, i32
  }
  func.func @transform_6(%arg0: i32, %arg1: i32) -> (i32, i32) {
    %c0_i32 = arith.constant 0 : i32
    %c0_i32_0 = arith.constant 0 : i32
    %c0_i32_1 = arith.constant 0 : i32
    return %c0_i32, %c0_i32_0 : i32, i32
  }
  func.func @transform_7(%arg0: i32, %arg1: i32) -> (i32, i32) {
    %c0_i32 = arith.constant 0 : i32
    %c0_i32_0 = arith.constant 0 : i32
    %c0_i32_1 = arith.constant 0 : i32
    return %c0_i32, %c0_i32_0 : i32, i32
  }
}

module attributes {stable_mosaic.version = 11 : i64} {
  func.func @gcn_layer_kernel(%arg0: i32, %arg1: i32, %arg2: memref<128x128xbf16, #tpu.memory_space<vmem>>, %arg3: memref<128x128xbf16, #tpu.memory_space<vmem>>, %arg4: memref<128x128xf32, #tpu.memory_space<vmem>>, %arg5: memref<1x128xf32, #tpu.memory_space<vmem>>, %arg6: memref<128x128xbf16, #tpu.memory_space<vmem>>, %arg7: memref<128x128xf32, #tpu.memory_space<vmem>>) attributes {dimension_semantics = [#tpu.dimension_semantics<parallel>, #tpu.dimension_semantics<arbitrary>], iteration_bounds = array<i64: 1, 1>, scalar_prefetch = 0 : i64, scratch_operands = 1 : i64, tpu.core_type = #tpu.core_type<tc>, window_params = [{transform_indices = @transform_0, window_bounds = array<i64: 128, 128>}, {transform_indices = @transform_1, window_bounds = array<i64: 128, 128>}, {pipeline_mode = #tpu.pipeline_mode<synchronous>, transform_indices = @transform_2, window_bounds = array<i64: 128, 128>}, {pipeline_mode = #tpu.pipeline_mode<synchronous>, transform_indices = @transform_3, window_bounds = array<i64: 1, 128>}, {transform_indices = @transform_4, window_bounds = array<i64: 128, 128>}]} {
    %c0_i32 = arith.constant 0 : i32
    %0 = arith.cmpi eq, %arg1, %c0_i32 : i32
    %1 = arith.extui %0 : i1 to i32
    %c0_i32_0 = arith.constant 0 : i32
    %2 = arith.cmpi ne, %1, %c0_i32_0 : i32
    scf.if %2 {
      %cst_10 = arith.constant 0.000000e+00 : f32
      %12 = vector.broadcast %cst_10 : f32 to vector<128x128xf32>
      %c0_11 = arith.constant 0 : index
      %c0_12 = arith.constant 0 : index
      %13 = vector.load %arg7[%c0_11, %c0_12] : memref<128x128xf32, #tpu.memory_space<vmem>>, vector<128x128xf32>
      tpu.vector_store %arg7[%c0_11, %c0_12], %12 {strides = array<i32>} : memref<128x128xf32, #tpu.memory_space<vmem>>, vector<128x128xf32>,
    } else {
    }
    %c0 = arith.constant 0 : index
    %c0_1 = arith.constant 0 : index
    %3 = vector.load %arg7[%c0, %c0_1] : memref<128x128xf32, #tpu.memory_space<vmem>>, vector<128x128xf32>
    %c0_2 = arith.constant 0 : index
    %c0_3 = arith.constant 0 : index
    %4 = vector.load %arg2[%c0_2, %c0_3] : memref<128x128xbf16, #tpu.memory_space<vmem>>, vector<128x128xbf16>
    %c0_4 = arith.constant 0 : index
    %c0_5 = arith.constant 0 : index
    %5 = vector.load %arg3[%c0_4, %c0_5] : memref<128x128xbf16, #tpu.memory_space<vmem>>, vector<128x128xbf16>
    %cst = arith.constant dense<0.000000e+00> : vector<128x128xf32>
    %6 = tpu.matmul %4, %5, %cst {dimension_numbers = #tpu.dot_dimension_numbers<[1], [0], [0], [1], [0, 0, 1, 1], [], []>} : vector<128x128xbf16>, vector<128x128xbf16>, vector<128x128xf32> -> vector<128x128xf32>
    %7 = arith.addf %3, %6 : vector<128x128xf32>
    %c0_6 = arith.constant 0 : index
    %c0_7 = arith.constant 0 : index
    %8 = vector.load %arg7[%c0_6, %c0_7] : memref<128x128xf32, #tpu.memory_space<vmem>>, vector<128x128xf32>
    tpu.vector_store %arg7[%c0_6, %c0_7], %7 {strides = array<i32>} : memref<128x128xf32, #tpu.memory_space<vmem>>, vector<128x128xf32>,
    %c0_i32_8 = arith.constant 0 : i32
    %9 = arith.cmpi eq, %arg1, %c0_i32_8 : i32
    %10 = arith.extui %9 : i1 to i32
    %c0_i32_9 = arith.constant 0 : i32
    %11 = arith.cmpi ne, %10, %c0_i32_9 : i32
    scf.if %11 {
      %c0_10 = arith.constant 0 : index
      %c0_11 = arith.constant 0 : index
      %12 = vector.load %arg7[%c0_10, %c0_11] : memref<128x128xf32, #tpu.memory_space<vmem>>, vector<128x128xf32>
      %c0_12 = arith.constant 0 : index
      %c0_13 = arith.constant 0 : index
      %13 = vector.load %arg4[%c0_12, %c0_13] : memref<128x128xf32, #tpu.memory_space<vmem>>, vector<128x128xf32>
      %cst_14 = arith.constant dense<0.000000e+00> : vector<128x128xf32>
      %14 = tpu.matmul %12, %13, %cst_14 {dimension_numbers = #tpu.dot_dimension_numbers<[1], [0], [0], [1], [0, 0, 1, 1], [], []>} : vector<128x128xf32>, vector<128x128xf32>, vector<128x128xf32> -> vector<128x128xf32>
      %c0_15 = arith.constant 0 : index
      %c0_16 = arith.constant 0 : index
      %15 = vector.load %arg5[%c0_15, %c0_16] : memref<1x128xf32, #tpu.memory_space<vmem>>, vector<1x128xf32>
      %16 = vector.broadcast %15 : vector<1x128xf32> to vector<128x128xf32>
      %17 = arith.addf %14, %16 : vector<128x128xf32>
      %cst_17 = arith.constant 0.000000e+00 : f32
      %18 = vector.broadcast %cst_17 : f32 to vector<128x128xf32>
      %19 = arith.maximumf %17, %18 : vector<128x128xf32>
      %20 = arith.truncf %19 : vector<128x128xf32> to vector<128x128xbf16>
      %c0_18 = arith.constant 0 : index
      %c0_19 = arith.constant 0 : index
      %21 = vector.load %arg6[%c0_18, %c0_19] : memref<128x128xbf16, #tpu.memory_space<vmem>>, vector<128x128xbf16>
      tpu.vector_store %arg6[%c0_18, %c0_19], %20 {strides = array<i32>} : memref<128x128xbf16, #tpu.memory_space<vmem>>, vector<128x128xbf16>,
    } else {
    }
    return
  }
  func.func @transform_0(%arg0: i32, %arg1: i32) -> (i32, i32) {
    %c0_i32 = arith.constant 0 : i32
    return %arg0, %arg1 : i32, i32
  }
  func.func @transform_1(%arg0: i32, %arg1: i32) -> (i32, i32) {
    %c0_i32 = arith.constant 0 : i32
    %c0_i32_0 = arith.constant 0 : i32
    return %arg1, %c0_i32 : i32, i32
  }
  func.func @transform_2(%arg0: i32, %arg1: i32) -> (i32, i32) {
    %c0_i32 = arith.constant 0 : i32
    %c0_i32_0 = arith.constant 0 : i32
    %c0_i32_1 = arith.constant 0 : i32
    return %c0_i32, %c0_i32_0 : i32, i32
  }
  func.func @transform_3(%arg0: i32, %arg1: i32) -> (i32, i32) {
    %c0_i32 = arith.constant 0 : i32
    %c0_i32_0 = arith.constant 0 : i32
    %c0_i32_1 = arith.constant 0 : i32
    return %c0_i32, %c0_i32_0 : i32, i32
  }
  func.func @transform_4(%arg0: i32, %arg1: i32) -> (i32, i32) {
    %c0_i32 = arith.constant 0 : i32
    %c0_i32_0 = arith.constant 0 : i32
    return %arg0, %c0_i32 : i32, i32
  }
}

</mosaic_0001>

<bundles_post_ra>
// kernel: gcn_forward.5
= control target key start
LH: loop header
LB: loop body
LE: loop exit
PB: predicated region body
PF: predicated region fallthrough
CT: control target
= control target key end

     0   :  { %v965_v48 = vmov 0.0   ;;  %vm966_vm0 = vmmov 0   ;;  %s1197_s1 = inlined_call_operand.vmem [shape: bf16[128,128], index: 1, kind: input, shape index: {}]   ;;  %s1198_s0 = inlined_call_operand.vmem [shape: bf16[128,128], index: 0, kind: input, shape index: {}]   ;;  %s1199_s2 = inlined_call_operand.vmem [shape: f32[128,128], index: 2, kind: input, shape index: {}]   ;;  %s1200_s5 = inlined_call_operand.vmem [shape: f32[128,128], index: 5, kind: input, shape index: {}]   ;;  %s1201_s3 = inlined_call_operand.vmem [shape: f32[1,128], index: 3, kind: input, shape index: {}]   ;;  %s1202_s4 = inlined_call_operand.vmem [shape: f32[8,128], index: 4, kind: input, shape index: {}]   ;;  %s1203_s6 = inlined_call_operand.vmem [shape: f32[1,128], index: 6, kind: input, shape index: {}]   ;;  %s1204_s7 = inlined_call_operand.vmem [shape: f32[8,128], index: 7, kind: output, shape index: {}]  }
   0x1   :  { %v949_v0 = vld [vmem:[%s1197_s1 + $0x38] sm:$0xff]   ;;  %v950_v1 = vld [vmem:[%s1197_s1 + $0x30] sm:$0xff]   ;;  %v951_v2 = vld [vmem:[%s1197_s1 + $0x28] sm:$0xff]  }
   0x2   :  { %789 = vmatprep.subr.bf16.mxu0 %v949_v0  ;;  %v952_v3 = vld [vmem:[%s1197_s1 + $0x20] sm:$0xff]   ;;  %v953_v5 = vld [vmem:[%s1197_s1 + $0x18] sm:$0xff]   ;;  %v954_v6 = vld [vmem:[%s1197_s1 + $0x10] sm:$0xff]  }
   0x3   :  { %790 = vmatpush3.bf16.msra.mxu0 %v949_v0  ;;  %v957_v4 = vld [vmem:[%s1198_s0] sm:$0xff]   ;;  %v360_v7 = vld [vmem:[%s1199_s2 + $0x78] sm:$0xff]  ;;  %v359_v8 = vld [vmem:[%s1199_s2 + $0x70] sm:$0xff] }
   0x4   :  { %791 = vmatprep.subr.bf16.mxu0 %v950_v1  ;;  %805 = vmatprep.mubr.bf16.mxu0 %v957_v4  ;;  %v358_v9 = vld [vmem:[%s1199_s2 + $0x68] sm:$0xff]  ;;  %v357_v11 = vld [vmem:[%s1199_s2 + $0x60] sm:$0xff]  ;;  %v356_v12 = vld [vmem:[%s1199_s2 + $0x58] sm:$0xff] }
   0x5   :  { %821 = vmatprep.subr.mxu1 %v360_v7  ;;  %v955_v10 = vld [vmem:[%s1197_s1 + $0x8] sm:$0xff]   ;;  %v956_v13 = vld [vmem:[%s1197_s1] sm:$0xff]   ;;  %v355_v14 = vld [vmem:[%s1199_s2 + $0x50] sm:$0xff] }
   0x6   :  { %822 = vmatpush3.msra.mxu1 %v360_v7  ;;  %v354_v15 = vld [vmem:[%s1199_s2 + $0x48] sm:$0xff]  ;;  %v353_v16 = vld [vmem:[%s1199_s2 + $0x40] sm:$0xff]  ;;  %v352_v18 = vld [vmem:[%s1199_s2 + $0x38] sm:$0xff] }
   0x7   :  { %792 = vmatpush3.bf16.msra.mxu0 %v950_v1  ;;  %823 = vmatprep.subr.mxu1 %v359_v8  ;;  %v958_v17 = vld [vmem:[%s1198_s0 + $0x8] sm:$0xff]   ;;  %v959_v19 = vld [vmem:[%s1198_s0 + $0x10] sm:$0xff]   ;;  %v349_v22 = vld [vmem:[%s1199_s2 + $0x20] sm:$0xff] }
   0x8   :  { %793 = vmatprep.subr.bf16.mxu0 %v951_v2  ;;  %824 = vmatpush3.msra.mxu1 %v359_v8  ;;  %v351_v20 = vld [vmem:[%s1199_s2 + $0x30] sm:$0xff]  ;;  %v350_v21 = vld [vmem:[%s1199_s2 + $0x28] sm:$0xff]  ;;  %v960_v23 = vld [vmem:[%s1198_s0 + $0x18] sm:$0xff]  }
   0x9   :  { %825 = vmatprep.subr.mxu1 %v358_v9  ;;  %v348_v24 = vld [vmem:[%s1199_s2 + $0x18] sm:$0xff]  ;;  %v961_v25 = vld [vmem:[%s1198_s0 + $0x20] sm:$0xff]   ;;  %v962_v26 = vld [vmem:[%s1198_s0 + $0x28] sm:$0xff]  }
   0xa   :  { %826 = vmatpush3.msra.mxu1 %v358_v9  ;;  %v963_v27 = vld [vmem:[%s1198_s0 + $0x30] sm:$0xff]   ;;  %v964_v28 = vld [vmem:[%s1198_s0 + $0x38] sm:$0xff]   ;;  %v346_v30 = vld [vmem:[%s1199_s2 + $0x8] sm:$0xff] }
   0xb   :  { %794 = vmatpush3.bf16.msra.mxu0 %v951_v2  ;;  %827 = vmatprep.subr.mxu1 %v357_v11  ;;  %v347_v29 = vld [vmem:[%s1199_s2 + $0x10] sm:$0xff]  ;;  %v345_v31 = vld [vmem:[%s1199_s2] sm:$0xff]  ;;  %v606_v49 = vld [vmem:[%s1200_s5 + $0x78] sm:$0xff] }
   0xc   :  { %795 = vmatprep.subr.bf16.mxu0 %v952_v3  ;;  %828 = vmatpush3.msra.mxu1 %v357_v11  ;;  %v605_v50 = vld [vmem:[%s1200_s5 + $0x70] sm:$0xff]  ;;  %v604_v51 = vld [vmem:[%s1200_s5 + $0x68] sm:$0xff]  ;;  %v603_v52 = vld [vmem:[%s1200_s5 + $0x60] sm:$0xff] }
   0xd   :  { %829 = vmatprep.subr.mxu1 %v356_v12  ;;  %v602_v53 = vld [vmem:[%s1200_s5 + $0x58] sm:$0xff]  ;;  %v601_v54 = vld [vmem:[%s1200_s5 + $0x50] sm:$0xff]  ;;  %v600_v55 = vld [vmem:[%s1200_s5 + $0x48] sm:$0xff] }
   0xe   :  { %830 = vmatpush3.msra.mxu1 %v356_v12  ;;  %v599_v56 = vld [vmem:[%s1200_s5 + $0x40] sm:$0xff]  ;;  %v598_v57 = vld [vmem:[%s1200_s5 + $0x38] sm:$0xff]  ;;  %v597_v58 = vld [vmem:[%s1200_s5 + $0x30] sm:$0xff] }
   0xf   :  { %796 = vmatpush3.bf16.msra.mxu0 %v952_v3  ;;  %831 = vmatprep.subr.mxu1 %v355_v14  ;;  %v596_v59 = vld [vmem:[%s1200_s5 + $0x28] sm:$0xff]  ;;  %v595_v60 = vld [vmem:[%s1200_s5 + $0x20] sm:$0xff]  ;;  %v594_v61 = vld [vmem:[%s1200_s5 + $0x18] sm:$0xff] }
  0x10   :  { %797 = vmatprep.subr.bf16.mxu0 %v953_v5  ;;  %832 = vmatpush3.msra.mxu1 %v355_v14  ;;  %v593_v62 = vld [vmem:[%s1200_s5 + $0x10] sm:$0xff]  ;;  %v592_v63 = vld [vmem:[%s1200_s5 + $0x8] sm:$0xff]  ;;  %v705_v14 = vld [vmem:[%s1201_s3] ss:$0 sm:$0xff] }
  0x11   :  { %833 = vmatprep.subr.mxu1 %v354_v15 }
  0x12   :  { %834 = vmatpush3.msra.mxu1 %v354_v15 }
  0x13   :  { %798 = vmatpush3.bf16.msra.mxu0 %v953_v5  ;;  %835 = vmatprep.subr.mxu1 %v353_v16 }
  0x14   :  { %799 = vmatprep.subr.bf16.mxu0 %v954_v6  ;;  %836 = vmatpush3.msra.mxu1 %v353_v16 }
  0x15   :  { %837 = vmatprep.subr.mxu1 %v352_v18 }
  0x16   :  { %838 = vmatpush3.msra.mxu1 %v352_v18 }
  0x17   :  { %800 = vmatpush3.bf16.msra.mxu0 %v954_v6  ;;  %839 = vmatprep.subr.mxu1 %v351_v20 }
  0x18   :  { %801 = vmatprep.subr.bf16.mxu0 %v955_v10  ;;  %840 = vmatpush3.msra.mxu1 %v351_v20 }
  0x19   :  { %841 = vmatprep.subr.mxu1 %v350_v21 }
  0x1a   :  { %842 = vmatpush3.msra.mxu1 %v350_v21 }
  0x1b   :  { %802 = vmatpush3.bf16.msra.mxu0 %v955_v10  ;;  %843 = vmatprep.subr.mxu1 %v349_v22 }
  0x1c   :  { %803 = vmatprep.subr.bf16.mxu0 %v956_v13  ;;  %844 = vmatpush3.msra.mxu1 %v349_v22 }
  0x1d   :  { %845 = vmatprep.subr.mxu1 %v348_v24 }
  0x1e   :  { %846 = vmatpush3.msra.mxu1 %v348_v24 }
  0x1f   :  { %804 = vmatpush3.bf16.msra.mxu0 %v956_v13  ;;  %847 = vmatprep.subr.mxu1 %v347_v29 }
  0x20   :  { %848 = vmatpush3.msra.mxu1 %v347_v29  ;;  %877 = vmatprep.subr.mxu0 %v965_v48 }
  0x21   :  { %849 = vmatprep.subr.mxu1 %v346_v30 }
  0x22   :  { %806 = vmatmul.mubr.bf16.vlgmr.msra.gmra.mxu0 %v958_v17  ;;  %850 = vmatpush3.msra.mxu1 %v346_v30 }
  0x23   :  { %809 = vmatprep.mubr.bf16.mxu0 %v959_v19  ;;  %851 = vmatprep.subr.mxu1 %v345_v31 }
  0x24   :  { %852 = vmatpush3.msra.mxu1 %v345_v31 }
  0x25   :  { %912 = vmatprep.subr.mxu1 %v965_v48 }
  0x2a   :  { %810 = vmatmul.mubr.bf16.gmra.mxu0 %v960_v23 }
  0x2b   :  { %813 = vmatprep.mubr.bf16.mxu0 %v961_v25 }
  0x32   :  { %814 = vmatmul.mubr.bf16.gmra.mxu0 %v962_v26 }
  0x33   :  { %817 = vmatprep.mubr.bf16.mxu0 %v963_v27 }
  0x3a   :  { %818 = vmatmul.mubr.bf16.gmra.mxu0 %v964_v28 }
  0x3b   :  { %909 = vmatprep.mubr.msk.f32.mxu0 %vm966_vm0, %v965_v48 }
  0xe2   :  { %v807_v32 = vpop.f32.mrf.mxu0 }
  0xe4   :  { %v231_v33 = vpop.f32.mrf.mxu0 }
  0xe5   :  { %853 = vmatprep.mubr.f32.mxu1 %v231_v33  ;;  %v514_v33 = vld [vmem:[%s1202_s4] sm:$0xff] }
  0xe6   :  { %v808_v34 = vpop.f32.mrf.mxu0 }
  0xe8   :  { %v234_v35 = vpop.f32.mrf.mxu0 }
  0xe9   :  { %854 = vmatmul.mubr.f32.vlgmr.msra.gmra.mxu1 %v234_v35 }
  0xea   :  { %v811_v36 = vpop.f32.mrf.mxu0  ;;  %856 = vmatprep.mubr.f32.mxu1 %v807_v32  ;;  %913 = vmatpush3.msra.mxu1 %v606_v49 }
  0xeb   :  { %914 = vmatprep.subr.mxu1 %v965_v48 }
  0xec   :  { %v247_v37 = vpop.f32.mrf.mxu0  ;;  %915 = vmatpush3.msra.mxu1 %v605_v50 }
  0xed   :  { %857 = vmatmul.mubr.f32.gmra.mxu1 %v808_v34  ;;  %916 = vmatprep.subr.mxu1 %v965_v48  ;;  %v591_v34 = vld [vmem:[%s1200_s5] sm:$0xff] }
  0xee   :  { %v812_v38 = vpop.f32.mrf.mxu0  ;;  %859 = vmatprep.mubr.f32.mxu1 %v247_v37  ;;  %917 = vmatpush3.msra.mxu1 %v604_v51  ;;  %v706_v37 = vld [vmem:[%s1203_s6] ss:$0 sm:$0xff] }
  0xef   :  { %918 = vmatprep.subr.mxu1 %v965_v48 }
  0xf0   :  { %v250_v39 = vpop.f32.mrf.mxu0  ;;  %919 = vmatpush3.msra.mxu1 %v603_v52 }
  0xf1   :  { %860 = vmatmul.mubr.f32.gmra.mxu1 %v250_v39  ;;  %920 = vmatprep.subr.mxu1 %v965_v48 }
  0xf2   :  { %v815_v40 = vpop.f32.mrf.mxu0  ;;  %862 = vmatprep.mubr.f32.mxu1 %v811_v36  ;;  %921 = vmatpush3.msra.mxu1 %v602_v53 }
  0xf3   :  { %922 = vmatprep.subr.mxu1 %v965_v48 }
  0xf4   :  { %v263_v41 = vpop.f32.mrf.mxu0  ;;  %923 = vmatpush3.msra.mxu1 %v601_v54 }
  0xf5   :  { %863 = vmatmul.mubr.f32.gmra.mxu1 %v812_v38  ;;  %924 = vmatprep.subr.mxu1 %v965_v48 }
  0xf6   :  { %v816_v42 = vpop.f32.mrf.mxu0  ;;  %865 = vmatprep.mubr.f32.mxu1 %v263_v41  ;;  %925 = vmatpush3.msra.mxu1 %v600_v55 }
  0xf7   :  { %926 = vmatprep.subr.mxu1 %v965_v48 }
  0xf8   :  { %v266_v43 = vpop.f32.mrf.mxu0  ;;  %927 = vmatpush3.msra.mxu1 %v599_v56 }
  0xf9   :  { %866 = vmatmul.mubr.f32.gmra.mxu1 %v266_v43  ;;  %928 = vmatprep.subr.mxu1 %v965_v48 }
  0xfa   :  { %v819_v44 = vpop.f32.mrf.mxu0  ;;  %868 = vmatprep.mubr.f32.mxu1 %v815_v40  ;;  %929 = vmatpush3.msra.mxu1 %v598_v57 }
  0xfb   :  { %930 = vmatprep.subr.mxu1 %v965_v48 }
  0xfc   :  { %v279_v45 = vpop.f32.mrf.mxu0  ;;  %931 = vmatpush3.msra.mxu1 %v597_v58 }
  0xfd   :  { %869 = vmatmul.mubr.f32.gmra.mxu1 %v816_v42  ;;  %932 = vmatprep.subr.mxu1 %v965_v48 }
  0xfe   :  { %v820_v46 = vpop.f32.mrf.mxu0  ;;  %871 = vmatprep.mubr.f32.mxu1 %v279_v45  ;;  %933 = vmatpush3.msra.mxu1 %v596_v59 }
  0xff   :  { %934 = vmatprep.subr.mxu1 %v965_v48 }
 0x100   :  { %v282_v47 = vpop.f32.mrf.mxu0  ;;  %935 = vmatpush3.msra.mxu1 %v595_v60 }
 0x101   :  { %872 = vmatmul.mubr.f32.gmra.mxu1 %v282_v47  ;;  %936 = vmatprep.subr.mxu1 %v965_v48 }
 0x102   :  { %874 = vmatprep.mubr.f32.mxu1 %v819_v44  ;;  %937 = vmatpush3.msra.mxu1 %v594_v61 }
 0x103   :  { %938 = vmatprep.subr.mxu1 %v965_v48 }
 0x104   :  { %939 = vmatpush3.msra.mxu1 %v593_v62 }
 0x105   :  { %875 = vmatmul.mubr.f32.gmra.mxu1 %v820_v46  ;;  %940 = vmatprep.subr.mxu1 %v965_v48 }
 0x106   :  { %944 = vmatprep.mubr.msk.f32.mxu1 %vm966_vm0, %v965_v48  ;;  %941 = vmatpush3.msra.mxu1 %v592_v63 }
 0x107   :  { %942 = vmatprep.subr.mxu1 %v965_v48 }
 0x108   :  { %943 = vmatpush3.msra.mxu1 %v591_v34 }
 0x1a9   :  { %v855_v0 = vpop.f32.mrf.mxu1 }
 0x1aa   :  { %v440_v31 = vadd.f32 %v855_v0, %v705_v14 }
 0x1ab   :  { %v434_v1 = vpop.f32.mrf.mxu1 }
 0x1ac   :  { %v435_v32 = vadd.f32 %v705_v14, %v434_v1 }
 0x1ad   :  { %v858_v2 = vpop.f32.mrf.mxu1 }
 0x1ae   :  { %v450_v29 = vadd.f32 %v858_v2, %v705_v14 }
 0x1af   :  { %v444_v3 = vpop.f32.mrf.mxu1 }
 0x1b0   :  { %v445_v30 = vadd.f32 %v705_v14, %v444_v3 }
 0x1b1   :  { %v861_v4 = vpop.f32.mrf.mxu1 }
 0x1b2   :  { %v460_v27 = vadd.f32 %v861_v4, %v705_v14 }
 0x1b3   :  { %v454_v5 = vpop.f32.mrf.mxu1 }
 0x1b4   :  { %v455_v28 = vadd.f32 %v705_v14, %v454_v5 }
 0x1b5   :  { %v864_v6 = vpop.f32.mrf.mxu1 }
 0x1b6   :  { %v470_v25 = vadd.f32 %v864_v6, %v705_v14 }
 0x1b7   :  { %v464_v7 = vpop.f32.mrf.mxu1 }
 0x1b8   :  { %v465_v26 = vadd.f32 %v705_v14, %v464_v7 }
 0x1b9   :  { %v867_v8 = vpop.f32.mrf.mxu1 }
 0x1ba   :  { %v480_v23 = vadd.f32 %v867_v8, %v705_v14 }
 0x1bb   :  { %v474_v9 = vpop.f32.mrf.mxu1 }
 0x1bc   :  { %v475_v24 = vadd.f32 %v705_v14, %v474_v9 }
 0x1bd   :  { %v870_v10 = vpop.f32.mrf.mxu1 }
 0x1be   :  { %v490_v21 = vadd.f32 %v870_v10, %v705_v14 }
 0x1bf   :  { %v484_v11 = vpop.f32.mrf.mxu1 }
 0x1c0   :  { %v485_v22 = vadd.f32 %v705_v14, %v484_v11 }
 0x1c1   :  { %v873_v12 = vpop.f32.mrf.mxu1 }
 0x1c2   :  { %v500_v19 = vadd.f32 %v873_v12, %v705_v14 }
 0x1c3   :  { %v494_v13 = vpop.f32.mrf.mxu1 }
 0x1c4   :  { %v495_v20 = vadd.f32 %v705_v14, %v494_v13 }
 0x1c5   :  { %v876_v15 = vpop.f32.mrf.mxu1 }
 0x1c6   :  { %v510_v16 = vadd.f32 %v876_v15, %v705_v14 }
 0x1c7   :  { %v504_v17 = vpop.f32.mrf.mxu1 }
 0x1c8   :  { %v505_v18 = vadd.f32 %v705_v14, %v504_v17  ;;  %878 = vmatpush3.msra.mxu0 %v510_v16 }
 0x1c9   :  { %879 = vmatprep.subr.mxu0 %v965_v48 }
 0x1ca   :  { %880 = vmatpush3.msra.mxu0 %v505_v18 }
 0x1cb   :  { %881 = vmatprep.subr.mxu0 %v965_v48 }
 0x1cc   :  { %882 = vmatpush3.msra.mxu0 %v500_v19 }
 0x1cd   :  { %883 = vmatprep.subr.mxu0 %v965_v48 }
 0x1ce   :  { %884 = vmatpush3.msra.mxu0 %v495_v20 }
 0x1cf   :  { %885 = vmatprep.subr.mxu0 %v965_v48 }
 0x1d0   :  { %886 = vmatpush3.msra.mxu0 %v490_v21 }
 0x1d1   :  { %887 = vmatprep.subr.mxu0 %v965_v48 }
 0x1d2   :  { %888 = vmatpush3.msra.mxu0 %v485_v22 }
 0x1d3   :  { %889 = vmatprep.subr.mxu0 %v965_v48 }
 0x1d4   :  { %890 = vmatpush3.msra.mxu0 %v480_v23 }
 0x1d5   :  { %891 = vmatprep.subr.mxu0 %v965_v48 }
 0x1d6   :  { %892 = vmatpush3.msra.mxu0 %v475_v24 }
 0x1d7   :  { %893 = vmatprep.subr.mxu0 %v965_v48 }
 0x1d8   :  { %894 = vmatpush3.msra.mxu0 %v470_v25 }
 0x1d9   :  { %895 = vmatprep.subr.mxu0 %v965_v48 }
 0x1da   :  { %896 = vmatpush3.msra.mxu0 %v465_v26 }
 0x1db   :  { %897 = vmatprep.subr.mxu0 %v965_v48 }
 0x1dc   :  { %898 = vmatpush3.msra.mxu0 %v460_v27 }
 0x1dd   :  { %899 = vmatprep.subr.mxu0 %v965_v48 }
 0x1de   :  { %900 = vmatpush3.msra.mxu0 %v455_v28 }
 0x1df   :  { %901 = vmatprep.subr.mxu0 %v965_v48 }
 0x1e0   :  { %902 = vmatpush3.msra.mxu0 %v450_v29 }
 0x1e1   :  { %903 = vmatprep.subr.mxu0 %v965_v48 }
 0x1e2   :  { %904 = vmatpush3.msra.mxu0 %v445_v30 }
 0x1e3   :  { %905 = vmatprep.subr.mxu0 %v965_v48 }
 0x1e4   :  { %906 = vmatpush3.msra.mxu0 %v440_v31 }
 0x1e5   :  { %907 = vmatprep.subr.mxu0 %v965_v48 }
 0x1e6   :  { %908 = vmatpush3.msra.mxu0 %v435_v32 }
 0x1e7   :  { %910 = vmatmul.mubr.f32.vlgmr.msra.gmra.mxu0 %v514_v33 }
 0x2a7   :  { %v581_v35 = vpop.f32.mrf.mxu0 }
 0x2a8   :  { %945 = vmatmul.mubr.f32.vlgmr.msra.gmra.mxu1 %v581_v35 }
 0x2a9   :  { %v911_v36 = vpop.f32.mrf.mxu0 }
 0x368   :  { %v680_v38 = vpop.f32.mrf.mxu1 }
 0x369   :  { %v681_v39 = vadd.f32 %v706_v37, %v680_v38 }
 0x36a   :  { %v946_v40 = vpop.f32.mrf.mxu1 }
 0x36b   :  { %684 = vst [vmem:[%s1204_s7] sm:$0xff] %v681_v39 }

// kernel: gcn_forward.3
= control target key start
LH: loop header
LB: loop body
LE: loop exit
PB: predicated region body
PF: predicated region fallthrough
CT: control target
= control target key end

     0   :  { %s994_s1 = inlined_call_operand.vmem [shape: bf16[128,128], index: 1, kind: input, shape index: {}]   ;;  %s995_s0 = inlined_call_operand.vmem [shape: bf16[128,128], index: 0, kind: input, shape index: {}]   ;;  %s996_s2 = inlined_call_operand.vmem [shape: f32[128,128], index: 2, kind: input, shape index: {}]   ;;  %s997_s3 = inlined_call_operand.vmem [shape: f32[1,128], index: 3, kind: input, shape index: {}]   ;;  %s998_s4 = inlined_call_operand.vmem [shape: bf16[128,128], index: 4, kind: output, shape index: {}]  }
   0x1   :  { %v830_v0 = vld [vmem:[%s994_s1 + $0x38] sm:$0xff]   ;;  %v831_v1 = vld [vmem:[%s994_s1 + $0x30] sm:$0xff]   ;;  %v832_v2 = vld [vmem:[%s994_s1 + $0x28] sm:$0xff]  }
   0x2   :  { %742 = vmatprep.subr.bf16.mxu0 %v830_v0  ;;  %v833_v3 = vld [vmem:[%s994_s1 + $0x20] sm:$0xff]   ;;  %v834_v5 = vld [vmem:[%s994_s1 + $0x18] sm:$0xff]   ;;  %v835_v6 = vld [vmem:[%s994_s1 + $0x10] sm:$0xff]  }
   0x3   :  { %743 = vmatpush3.bf16.msra.mxu0 %v830_v0  ;;  %v838_v4 = vld [vmem:[%s995_s0] sm:$0xff]   ;;  %v345_v7 = vld [vmem:[%s996_s2 + $0x78] sm:$0xff]  ;;  %v344_v8 = vld [vmem:[%s996_s2 + $0x70] sm:$0xff] }
   0x4   :  { %744 = vmatprep.subr.bf16.mxu0 %v831_v1  ;;  %758 = vmatprep.mubr.bf16.mxu0 %v838_v4  ;;  %v343_v9 = vld [vmem:[%s996_s2 + $0x68] sm:$0xff]  ;;  %v342_v11 = vld [vmem:[%s996_s2 + $0x60] sm:$0xff]  ;;  %v341_v12 = vld [vmem:[%s996_s2 + $0x58] sm:$0xff] }
   0x5   :  { %774 = vmatprep.subr.mxu1 %v345_v7  ;;  %v836_v10 = vld [vmem:[%s994_s1 + $0x8] sm:$0xff]   ;;  %v837_v13 = vld [vmem:[%s994_s1] sm:$0xff]   ;;  %v340_v14 = vld [vmem:[%s996_s2 + $0x50] sm:$0xff] }
   0x6   :  { %775 = vmatpush3.msra.mxu1 %v345_v7  ;;  %v339_v15 = vld [vmem:[%s996_s2 + $0x48] sm:$0xff]  ;;  %v338_v16 = vld [vmem:[%s996_s2 + $0x40] sm:$0xff]  ;;  %v337_v18 = vld [vmem:[%s996_s2 + $0x38] sm:$0xff] }
   0x7   :  { %745 = vmatpush3.bf16.msra.mxu0 %v831_v1  ;;  %776 = vmatprep.subr.mxu1 %v344_v8  ;;  %v839_v17 = vld [vmem:[%s995_s0 + $0x8] sm:$0xff]   ;;  %v840_v19 = vld [vmem:[%s995_s0 + $0x10] sm:$0xff]   ;;  %v334_v22 = vld [vmem:[%s996_s2 + $0x20] sm:$0xff] }
   0x8   :  { %746 = vmatprep.subr.bf16.mxu0 %v832_v2  ;;  %777 = vmatpush3.msra.mxu1 %v344_v8  ;;  %v336_v20 = vld [vmem:[%s996_s2 + $0x30] sm:$0xff]  ;;  %v335_v21 = vld [vmem:[%s996_s2 + $0x28] sm:$0xff]  ;;  %v841_v23 = vld [vmem:[%s995_s0 + $0x18] sm:$0xff]  }
   0x9   :  { %778 = vmatprep.subr.mxu1 %v343_v9  ;;  %v333_v24 = vld [vmem:[%s996_s2 + $0x18] sm:$0xff]  ;;  %v842_v25 = vld [vmem:[%s995_s0 + $0x20] sm:$0xff]   ;;  %v843_v26 = vld [vmem:[%s995_s0 + $0x28] sm:$0xff]  }
   0xa   :  { %779 = vmatpush3.msra.mxu1 %v343_v9  ;;  %v844_v27 = vld [vmem:[%s995_s0 + $0x30] sm:$0xff]   ;;  %v845_v28 = vld [vmem:[%s995_s0 + $0x38] sm:$0xff]   ;;  %v331_v30 = vld [vmem:[%s996_s2 + $0x8] sm:$0xff] }
   0xb   :  { %747 = vmatpush3.bf16.msra.mxu0 %v832_v2  ;;  %780 = vmatprep.subr.mxu1 %v342_v11  ;;  %v332_v29 = vld [vmem:[%s996_s2 + $0x10] sm:$0xff]  ;;  %v330_v31 = vld [vmem:[%s996_s2] sm:$0xff] }
   0xc   :  { %748 = vmatprep.subr.bf16.mxu0 %v833_v3  ;;  %781 = vmatpush3.msra.mxu1 %v342_v11  ;;  %v614_v48 = vld [vmem:[%s997_s3] ss:$0 sm:$0xff] }
   0xd   :  { %782 = vmatprep.subr.mxu1 %v341_v12 }
   0xe   :  { %783 = vmatpush3.msra.mxu1 %v341_v12 }
   0xf   :  { %749 = vmatpush3.bf16.msra.mxu0 %v833_v3  ;;  %784 = vmatprep.subr.mxu1 %v340_v14 }
  0x10   :  { %750 = vmatprep.subr.bf16.mxu0 %v834_v5  ;;  %785 = vmatpush3.msra.mxu1 %v340_v14 }
  0x11   :  { %786 = vmatprep.subr.mxu1 %v339_v15 }
  0x12   :  { %787 = vmatpush3.msra.mxu1 %v339_v15 }
  0x13   :  { %751 = vmatpush3.bf16.msra.mxu0 %v834_v5  ;;  %788 = vmatprep.subr.mxu1 %v338_v16 }
  0x14   :  { %752 = vmatprep.subr.bf16.mxu0 %v835_v6  ;;  %789 = vmatpush3.msra.mxu1 %v338_v16 }
  0x15   :  { %790 = vmatprep.subr.mxu1 %v337_v18 }
  0x16   :  { %791 = vmatpush3.msra.mxu1 %v337_v18 }
  0x17   :  { %753 = vmatpush3.bf16.msra.mxu0 %v835_v6  ;;  %792 = vmatprep.subr.mxu1 %v336_v20 }
  0x18   :  { %754 = vmatprep.subr.bf16.mxu0 %v836_v10  ;;  %793 = vmatpush3.msra.mxu1 %v336_v20 }
  0x19   :  { %794 = vmatprep.subr.mxu1 %v335_v21 }
  0x1a   :  { %795 = vmatpush3.msra.mxu1 %v335_v21 }
  0x1b   :  { %755 = vmatpush3.bf16.msra.mxu0 %v836_v10  ;;  %796 = vmatprep.subr.mxu1 %v334_v22 }
  0x1c   :  { %756 = vmatprep.subr.bf16.mxu0 %v837_v13  ;;  %797 = vmatpush3.msra.mxu1 %v334_v22 }
  0x1d   :  { %798 = vmatprep.subr.mxu1 %v333_v24 }
  0x1e   :  { %799 = vmatpush3.msra.mxu1 %v333_v24 }
  0x1f   :  { %757 = vmatpush3.bf16.msra.mxu0 %v837_v13  ;;  %800 = vmatprep.subr.mxu1 %v332_v29 }
  0x20   :  { %801 = vmatpush3.msra.mxu1 %v332_v29 }
  0x21   :  { %802 = vmatprep.subr.mxu1 %v331_v30 }
  0x22   :  { %759 = vmatmul.mubr.bf16.vlgmr.msra.gmra.mxu0 %v839_v17  ;;  %803 = vmatpush3.msra.mxu1 %v331_v30 }
  0x23   :  { %762 = vmatprep.mubr.bf16.mxu0 %v840_v19  ;;  %804 = vmatprep.subr.mxu1 %v330_v31 }
  0x24   :  { %805 = vmatpush3.msra.mxu1 %v330_v31 }
  0x2a   :  { %763 = vmatmul.mubr.bf16.gmra.mxu0 %v841_v23 }
  0x2b   :  { %766 = vmatprep.mubr.bf16.mxu0 %v842_v25 }
  0x32   :  { %767 = vmatmul.mubr.bf16.gmra.mxu0 %v843_v26 }
  0x33   :  { %770 = vmatprep.mubr.bf16.mxu0 %v844_v27 }
  0x3a   :  { %771 = vmatmul.mubr.bf16.gmra.mxu0 %v845_v28 }
  0xe2   :  { %v760_v32 = vpop.f32.mrf.mxu0 }
  0xe4   :  { %v216_v33 = vpop.f32.mrf.mxu0 }
  0xe5   :  { %806 = vmatprep.mubr.f32.mxu1 %v216_v33 }
  0xe6   :  { %v761_v34 = vpop.f32.mrf.mxu0 }
  0xe8   :  { %v219_v35 = vpop.f32.mrf.mxu0 }
  0xe9   :  { %807 = vmatmul.mubr.f32.vlgmr.msra.gmra.mxu1 %v219_v35 }
  0xea   :  { %v764_v36 = vpop.f32.mrf.mxu0  ;;  %809 = vmatprep.mubr.f32.mxu1 %v760_v32 }
  0xec   :  { %v232_v37 = vpop.f32.mrf.mxu0 }
  0xed   :  { %810 = vmatmul.mubr.f32.gmra.mxu1 %v761_v34 }
  0xee   :  { %v765_v38 = vpop.f32.mrf.mxu0  ;;  %812 = vmatprep.mubr.f32.mxu1 %v232_v37 }
  0xf0   :  { %v235_v39 = vpop.f32.mrf.mxu0 }
  0xf1   :  { %813 = vmatmul.mubr.f32.gmra.mxu1 %v235_v39 }
  0xf2   :  { %v768_v40 = vpop.f32.mrf.mxu0  ;;  %815 = vmatprep.mubr.f32.mxu1 %v764_v36 }
  0xf4   :  { %v248_v41 = vpop.f32.mrf.mxu0 }
  0xf5   :  { %816 = vmatmul.mubr.f32.gmra.mxu1 %v765_v38 }
  0xf6   :  { %v769_v42 = vpop.f32.mrf.mxu0  ;;  %818 = vmatprep.mubr.f32.mxu1 %v248_v41 }
  0xf8   :  { %v251_v43 = vpop.f32.mrf.mxu0 }
  0xf9   :  { %819 = vmatmul.mubr.f32.gmra.mxu1 %v251_v43 }
  0xfa   :  { %v772_v44 = vpop.f32.mrf.mxu0  ;;  %821 = vmatprep.mubr.f32.mxu1 %v768_v40 }
  0xfc   :  { %v264_v45 = vpop.f32.mrf.mxu0 }
  0xfd   :  { %822 = vmatmul.mubr.f32.gmra.mxu1 %v769_v42 }
  0xfe   :  { %v773_v46 = vpop.f32.mrf.mxu0  ;;  %824 = vmatprep.mubr.f32.mxu1 %v264_v45 }
 0x100   :  { %v267_v47 = vpop.f32.mrf.mxu0 }
 0x101   :  { %825 = vmatmul.mubr.f32.gmra.mxu1 %v267_v47 }
 0x102   :  { %827 = vmatprep.mubr.f32.mxu1 %v772_v44 }
 0x105   :  { %828 = vmatmul.mubr.f32.gmra.mxu1 %v773_v46 }
 0x1a9   :  { %v808_v49 = vpop.f32.mrf.mxu1 }
 0x1aa   :  { %v425_v50 = vadd.f32 %v808_v49, %v614_v48 }
 0x1ab   :  { %v419_v51 = vpop.f32.mrf.mxu1 }
 0x1ac   :  { %v420_v52 = vadd.f32 %v614_v48, %v419_v51  ;;  %v499_v54 = vmax.f32 %v425_v50, 0.0 }
 0x1ad   :  { %v811_v53 = vpop.f32.mrf.mxu1 }
 0x1ae   :  { %v498_v55 = vmax.f32 %v420_v52, 0.0  ;;  %v435_v56 = vadd.f32 %v811_v53, %v614_v48 }
 0x1af   :  { %v429_v57 = vpop.f32.mrf.mxu1 }
 0x1b0   :  { %v650_v58 = vpack.c.bf16 %v499_v54, %v498_v55  ;;  %v430_v59 = vadd.f32 %v614_v48, %v429_v57  ;;  %v501_v61 = vmax.f32 %v435_v56, 0.0 }
 0x1b1   :  { %v814_v60 = vpop.f32.mrf.mxu1 }
 0x1b2   :  { %651 = vst [vmem:[%s998_s4] sm:$0xff] %v650_v58   ;;  %v500_v62 = vmax.f32 %v430_v59, 0.0  ;;  %v445_v63 = vadd.f32 %v814_v60, %v614_v48 }
 0x1b3   :  { %v439_v0 = vpop.f32.mrf.mxu1 }
 0x1b4   :  { %v655_v1 = vpack.c.bf16 %v501_v61, %v500_v62  ;;  %v440_v2 = vadd.f32 %v614_v48, %v439_v0  ;;  %v503_v4 = vmax.f32 %v445_v63, 0.0 }
 0x1b5   :  { %v817_v3 = vpop.f32.mrf.mxu1 }
 0x1b6   :  { %687 = vst [vmem:[%s998_s4 + $0x8] sm:$0xff] %v655_v1   ;;  %v502_v5 = vmax.f32 %v440_v2, 0.0  ;;  %v455_v6 = vadd.f32 %v817_v3, %v614_v48 }
 0x1b7   :  { %v449_v7 = vpop.f32.mrf.mxu1 }
 0x1b8   :  { %v660_v8 = vpack.c.bf16 %v503_v4, %v502_v5  ;;  %v450_v9 = vadd.f32 %v614_v48, %v449_v7  ;;  %v505_v11 = vmax.f32 %v455_v6, 0.0 }
 0x1b9   :  { %v820_v10 = vpop.f32.mrf.mxu1 }
 0x1ba   :  { %688 = vst [vmem:[%s998_s4 + $0x10] sm:$0xff] %v660_v8   ;;  %v504_v12 = vmax.f32 %v450_v9, 0.0  ;;  %v465_v13 = vadd.f32 %v820_v10, %v614_v48 }
 0x1bb   :  { %v459_v14 = vpop.f32.mrf.mxu1 }
 0x1bc   :  { %v665_v15 = vpack.c.bf16 %v505_v11, %v504_v12  ;;  %v460_v16 = vadd.f32 %v614_v48, %v459_v14  ;;  %v507_v18 = vmax.f32 %v465_v13, 0.0 }
 0x1bd   :  { %v823_v17 = vpop.f32.mrf.mxu1 }
 0x1be   :  { %689 = vst [vmem:[%s998_s4 + $0x18] sm:$0xff] %v665_v15   ;;  %v506_v19 = vmax.f32 %v460_v16, 0.0  ;;  %v475_v20 = vadd.f32 %v823_v17, %v614_v48 }
 0x1bf   :  { %v469_v21 = vpop.f32.mrf.mxu1 }
 0x1c0   :  { %v670_v22 = vpack.c.bf16 %v507_v18, %v506_v19  ;;  %v470_v23 = vadd.f32 %v614_v48, %v469_v21  ;;  %v509_v25 = vmax.f32 %v475_v20, 0.0 }
 0x1c1   :  { %v826_v24 = vpop.f32.mrf.mxu1 }
 0x1c2   :  { %690 = vst [vmem:[%s998_s4 + $0x20] sm:$0xff] %v670_v22   ;;  %v508_v26 = vmax.f32 %v470_v23, 0.0  ;;  %v485_v27 = vadd.f32 %v826_v24, %v614_v48 }
 0x1c3   :  { %v479_v28 = vpop.f32.mrf.mxu1 }
 0x1c4   :  { %v675_v29 = vpack.c.bf16 %v509_v25, %v508_v26  ;;  %v480_v30 = vadd.f32 %v614_v48, %v479_v28  ;;  %v511_v32 = vmax.f32 %v485_v27, 0.0 }
 0x1c5   :  { %v829_v31 = vpop.f32.mrf.mxu1 }
 0x1c6   :  { %691 = vst [vmem:[%s998_s4 + $0x28] sm:$0xff] %v675_v29   ;;  %v510_v33 = vmax.f32 %v480_v30, 0.0  ;;  %v495_v34 = vadd.f32 %v829_v31, %v614_v48 }
 0x1c7   :  { %v489_v35 = vpop.f32.mrf.mxu1 }
 0x1c8   :  { %v680_v36 = vpack.c.bf16 %v511_v32, %v510_v33  ;;  %v490_v37 = vadd.f32 %v614_v48, %v489_v35  ;;  %v513_v38 = vmax.f32 %v495_v34, 0.0 }
 0x1ca   :  { %692 = vst [vmem:[%s998_s4 + $0x30] sm:$0xff] %v680_v36   ;;  %v512_v39 = vmax.f32 %v490_v37, 0.0 }
 0x1cc   :  { %v685_v40 = vpack.c.bf16 %v513_v38, %v512_v39 }
 0x1ce   :  { %693 = vst [vmem:[%s998_s4 + $0x38] sm:$0xff] %v685_v40  }

</bundles_post_ra>
